<compile_context>
chip_gen: v7x
topology: tpu7x:2x2x1
jax: 0.10.0
libtpu: 0.0.40
codegen_flags: <defaults>
</compile_context>

<pallas_src>
import functools

import jax
import jax.numpy as jnp
from jax.experimental import pallas as pl
from jax.experimental.pallas import tpu as pltpu


def _multinomial_kernel(*refs, k, num_cat, use_tri):
    """Sample k category indices (with replacement) per row.

    refs (use_tri=True):  x_ref (Bt, C), tri_ref (C, C), u_ref (Bt, k), o_ref (Bt, k)
    refs (use_tri=False): x_ref (Bt, C), u_ref (Bt, k), o_ref (Bt, k)
    """
    if use_tri:
        x_ref, tri_ref, u_ref, o_ref = refs
    else:
        x_ref, u_ref, o_ref = refs

    w = x_ref[...].astype(jnp.float32)                       # (Bt, C)

    if use_tri:
        # Inclusive CDF via resident lower-triangular ones matmul on the MXU:
        #   cdf[:, j] = sum_{i <= j} w[:, i]
        cdf = jnp.dot(w, tri_ref[...], preferred_element_type=jnp.float32)
    else:
        # Large-C path: avoid the C^2 tri tile entirely.
        cdf = jnp.cumsum(w, axis=-1)

    # Row total taken from the CDF itself (same rounding as every cdf entry),
    # so u < 1  =>  thresh < cdf[:, -1] and the count below is always < C.
    total = cdf[:, num_cat - 1:num_cat]                       # (Bt, 1)

    u = u_ref[...].astype(jnp.float32)                        # (Bt, k) in [0, 1)
    thresh = u * total                                        # (Bt, k) in [0, total)

    # Inverse-CDF: idx = #{c : cdf[c] <= thresh}.  One dense (Bt, C) compare +
    # lane reduction per sample keeps sublanes fully packed.
    cols = []
    for s in range(k):                                        # k is small & static
        t_s = thresh[:, s:s + 1]                              # (Bt, 1)
        cnt = jnp.sum((cdf <= t_s).astype(jnp.int32), axis=-1, keepdims=True)
        cols.append(cnt)                                      # (Bt, 1)
    o_ref[...] = jnp.concatenate(cols, axis=-1).astype(o_ref.dtype)


def super_sampler_forward(x, k=3, seed=0, block_rows=None):
    """Pallas equivalent of torch.multinomial(x, k, replacement=True).

    x    : (B, C) or (C,) non-negative weights (float)
    k    : number of samples per row (with replacement)
    seed : int seed driving jax.random for the uniforms
    out  : (B, k) int32 category indices  (or (k,) for 1-D input)
    """
    squeeze = False
    if x.ndim == 1:                        # torch accepts 1-D weight vectors too
        x = x[None, :]
        squeeze = True
    B, C = x.shape

    # Row-block size: 128 fills the MXU M dimension (one full pass on v5e's
    # 128x128 MXU) and amortizes grid-step overhead; working set per step is
    # ~2*block_rows*C*4 (double-buffered x) + C*C*4 (resident tri, small-C
    # path only) + block_rows*C*4 (f32 cdf) -- comfortably inside every
    # chip's VMEM for the shapes this path is used with.
    if block_rows is None:
        block_rows = B if B <= 128 else 128
    grid = (pl.cdiv(B, block_rows),)

    # Uniforms in [0, 1) drawn outside the kernel (portable; on-chip PRNG
    # primitives are TPU-only and break interpret-mode runs).
    u = jax.random.uniform(jax.random.PRNGKey(seed), (B, k), dtype=jnp.float32)

    use_tri = C < 1024

    inputs = [x]
    in_specs = [pl.BlockSpec((block_rows, C), lambda i: (i, 0))]  # lane-dense C

    if use_tri:
        # Lower-triangular ones matrix, built once; index_map is constant so
        # the block stays VMEM-resident across all grid steps (single DMA).
        row = jax.lax.broadcasted_iota(jnp.int32, (C, C), 0)
        col = jax.lax.broadcasted_iota(jnp.int32, (C, C), 1)
        tri = (row <= col).astype(jnp.float32)                 # (C, C)
        inputs.append(tri)
        in_specs.append(pl.BlockSpec((C, C), lambda i: (0, 0)))

    inputs.append(u)
    in_specs.append(pl.BlockSpec((block_rows, k), lambda i: (i, 0)))

    out = pl.pallas_call(
        functools.partial(_multinomial_kernel, k=k, num_cat=C, use_tri=use_tri),
        out_shape=jax.ShapeDtypeStruct((B, k), jnp.int32),
        grid=grid,
        in_specs=in_specs,
        out_specs=pl.BlockSpec((block_rows, k), lambda i: (i, 0)),
        compiler_params=pltpu.CompilerParams(
            # Row blocks are independent.
            dimension_semantics=("parallel",),
        ),
    )(*inputs)

    return out[0] if squeeze else out


if __name__ == "__main__":
    key = jax.random.PRNGKey(0)

    # Small 2-D weight matrix, consistent with torch.multinomial's input:
    # batch=8 rows, 128 categories (lane-dense), k=3 samples per row.
    B, C, k = 8, 128, 3
    x = jax.random.uniform(key, (B, C), dtype=jnp.float32, minval=0.1, maxval=1.0)
    # Make row 0 a point mass on category 5 so its samples are deterministic.
    x = x.at[0].set(jnp.zeros((C,), jnp.float32).at[5].set(1.0))

    samples = super_sampler_forward(x, k=k, seed=1234)
    samples = jax.block_until_ready(samples)

    # Sanity checks (sampling is stochastic, so we check semantics, not values).
    assert samples.shape == (B, k), samples.shape
    assert samples.dtype == jnp.int32, samples.dtype
    assert bool(jnp.all((samples >= 0) & (samples < C))), "index out of range"
    # Every sampled index must have strictly positive weight in its row.
    gathered_w = jnp.take_along_axis(x, samples, axis=1)
    assert bool(jnp.all(gathered_w > 0.0)), "sampled a zero-weight category"
    # Row 0 is a point mass on category 5 -> all its samples must be 5.
    assert bool(jnp.all(samples[0] == 5)), samples[0]

    print("KERNEL_OK")
</pallas_src>

<mosaic_0001>
module attributes {stable_mosaic.version = 11 : i64} {
  func.func @_multinomial_kernel(%arg0: i32, %arg1: memref<8x128xf32, #tpu.memory_space<vmem>>, %arg2: memref<128x128xf32, #tpu.memory_space<vmem>>, %arg3: memref<8x3xf32, #tpu.memory_space<vmem>>, %arg4: memref<8x3xi32, #tpu.memory_space<vmem>>) attributes {dimension_semantics = [#tpu.dimension_semantics<parallel>], iteration_bounds = array<i64: 1>, scalar_prefetch = 0 : i64, scratch_operands = 0 : i64, tpu.core_type = #tpu.core_type<tc>, window_params = [{transform_indices = @transform_0, window_bounds = array<i64: 8, 128>}, {pipeline_mode = #tpu.pipeline_mode<synchronous>, transform_indices = @transform_1, window_bounds = array<i64: 128, 128>}, {transform_indices = @transform_2, window_bounds = array<i64: 8, 3>}, {transform_indices = @transform_3, window_bounds = array<i64: 8, 3>}]} {
    %c0 = arith.constant 0 : index
    %c0_0 = arith.constant 0 : index
    %0 = vector.load %arg1[%c0, %c0_0] : memref<8x128xf32, #tpu.memory_space<vmem>>, vector<8x128xf32>
    %c0_1 = arith.constant 0 : index
    %c0_2 = arith.constant 0 : index
    %1 = vector.load %arg2[%c0_1, %c0_2] : memref<128x128xf32, #tpu.memory_space<vmem>>, vector<128x128xf32>
    %cst = arith.constant dense<0.000000e+00> : vector<8x128xf32>
    %2 = tpu.matmul %0, %1, %cst {dimension_numbers = #tpu.dot_dimension_numbers<[1], [0], [0], [1], [0, 0, 1, 1], [], []>} : vector<8x128xf32>, vector<128x128xf32>, vector<8x128xf32> -> vector<8x128xf32>
    %3 = vector.extract_strided_slice %2 {offsets = [0, 127], sizes = [8, 1], strides = [1, 1]} : vector<8x128xf32> to vector<8x1xf32>
    %c0_3 = arith.constant 0 : index
    %c0_4 = arith.constant 0 : index
    %4 = vector.load %arg3[%c0_3, %c0_4] : memref<8x3xf32, #tpu.memory_space<vmem>>, vector<8x3xf32>
    %5 = vector.broadcast %3 : vector<8x1xf32> to vector<8x3xf32>
    %6 = arith.mulf %4, %5 : vector<8x3xf32>
    %7 = vector.extract_strided_slice %6 {offsets = [0, 0], sizes = [8, 1], strides = [1, 1]} : vector<8x3xf32> to vector<8x1xf32>
    %8 = vector.broadcast %7 : vector<8x1xf32> to vector<8x128xf32>
    %9 = arith.cmpf ole, %2, %8 : vector<8x128xf32>
    %10 = arith.extui %9 : vector<8x128xi1> to vector<8x128xi32>
    %cst_5 = arith.constant dense<0> : vector<8xi32>
    %11 = vector.multi_reduction <add>, %10, %cst_5 [1] : vector<8x128xi32> to vector<8xi32>
    %12 = vector.shape_cast %11 : vector<8xi32> to vector<8x1xi32>
    %13 = vector.extract_strided_slice %6 {offsets = [0, 1], sizes = [8, 1], strides = [1, 1]} : vector<8x3xf32> to vector<8x1xf32>
    %14 = vector.broadcast %13 : vector<8x1xf32> to vector<8x128xf32>
    %15 = arith.cmpf ole, %2, %14 : vector<8x128xf32>
    %16 = arith.extui %15 : vector<8x128xi1> to vector<8x128xi32>
    %cst_6 = arith.constant dense<0> : vector<8xi32>
    %17 = vector.multi_reduction <add>, %16, %cst_6 [1] : vector<8x128xi32> to vector<8xi32>
    %18 = vector.shape_cast %17 : vector<8xi32> to vector<8x1xi32>
    %19 = vector.extract_strided_slice %6 {offsets = [0, 2], sizes = [8, 1], strides = [1, 1]} : vector<8x3xf32> to vector<8x1xf32>
    %20 = vector.broadcast %19 : vector<8x1xf32> to vector<8x128xf32>
    %21 = arith.cmpf ole, %2, %20 : vector<8x128xf32>
    %22 = arith.extui %21 : vector<8x128xi1> to vector<8x128xi32>
    %cst_7 = arith.constant dense<0> : vector<8xi32>
    %23 = vector.multi_reduction <add>, %22, %cst_7 [1] : vector<8x128xi32> to vector<8xi32>
    %24 = vector.shape_cast %23 : vector<8xi32> to vector<8x1xi32>
    %25 = tpu.concatenate %12, %18, %24 in 1 : vector<8x1xi32>, vector<8x1xi32>, vector<8x1xi32> -> vector<8x3xi32>
    %c0_8 = arith.constant 0 : index
    %c0_9 = arith.constant 0 : index
    %26 = vector.load %arg4[%c0_8, %c0_9] : memref<8x3xi32, #tpu.memory_space<vmem>>, vector<8x3xi32>
    tpu.vector_store %arg4[%c0_8, %c0_9], %25 {strides = array<i32>} : memref<8x3xi32, #tpu.memory_space<vmem>>, vector<8x3xi32>,
    return
  }
  func.func @transform_0(%arg0: i32) -> (i32, i32) {
    %c0_i32 = arith.constant 0 : i32
    %c0_i32_0 = arith.constant 0 : i32
    return %arg0, %c0_i32 : i32, i32
  }
  func.func @transform_1(%arg0: i32) -> (i32, i32) {
    %c0_i32 = arith.constant 0 : i32
    %c0_i32_0 = arith.constant 0 : i32
    %c0_i32_1 = arith.constant 0 : i32
    return %c0_i32, %c0_i32_0 : i32, i32
  }
  func.func @transform_2(%arg0: i32) -> (i32, i32) {
    %c0_i32 = arith.constant 0 : i32
    %c0_i32_0 = arith.constant 0 : i32
    return %arg0, %c0_i32 : i32, i32
  }
  func.func @transform_3(%arg0: i32) -> (i32, i32) {
    %c0_i32 = arith.constant 0 : i32
    %c0_i32_0 = arith.constant 0 : i32
    return %arg0, %c0_i32 : i32, i32
  }
}

</mosaic_0001>

<bundles_post_ra>
// kernel: tpu_custom_call.1
= control target key start
LH: loop header
LB: loop body
LE: loop exit
PB: predicated region body
PF: predicated region fallthrough
CT: control target
= control target key end

     0   :  { %8 = vsyncpa [#allocation3], 0  ;;  %s303_s12 = smov [#allocation2]   ;;  %s354_s0 = inlined_call_operand.vmem [shape: f32[8,128], index: 0, kind: input, shape index: {}]   ;;  %s355_s1 = inlined_call_operand.hbm [shape: f32[128,128], index: 1, kind: input, shape index: {}]   ;;  %s356_s2 = inlined_call_operand.vmem [shape: f32[8,3], index: 2, kind: input, shape index: {}]   ;;  %s357_s3 = inlined_call_operand.vmem [shape: s32[8,3], index: 3, kind: output, shape index: {}]  }
   0x1   :  { %s16_s13 = sshll.u32 %s303_s12, 4  ;;  %s279_s16 = scalar_lea.hbm %s355_s1, 2048  ;;  %s17_s13 = int_to_ptr.vmem [resolvable:$true] %s16_s13 }
   0x2   :  { %p280_p0 = scmp.ne.s32.totalorder %s355_s1, %s279_s16  ;;  %p283_p1 = scmp.lt.u32.totalorder %s279_s16, %s355_s1 }
   0x4   :  { %p285_p2 = pnand %p283_p1, %p280_p0 }
   0x6   :  { %288 = shalt.err (!%p285_p2)
}
   0x7   :  { %s289_s21 = scalar_lea.vmem %s17_s13, 2048  ;;  %p294_p4 = scmp.lt.s32.totalorder %s17_s13, %s17_s13 }
   0x8   :  { %p290_p3 = scmp.ne.s32.totalorder %s17_s13, %s289_s21  ;;  %p295_p5 = scmp.lt.s32.totalorder %s289_s21, %s289_s21 }
   0xa   :  { %p296_p6 = por %p295_p5, %p294_p4 }
   0xc   :  { %p297_p7 = pnand %p296_p6, %p290_p3 }
   0xe   :  { %300 = shalt.err (!%p297_p7)
}
   0xf   :  { %s304_s22 = smov 128   ;;  %s305_s23 = smov 8  }
  0x10   :  { %22 = dma.hbm_to_vmem [thread:$0]  %s355_s1, 2048, %s17_s13, [#allocation3], %s304_s22, %s304_s22, %s305_s23  }
  0x11   :  { %301 = dma.done.wait [#allocation3], 2048  }
  0x12   :  { %302 = vsyncadd [#allocation3], 4294965248  ;;  %v306_v0 = vmov 0.0|0.0   ;;  %vm307_vm0 = vmmov 0   ;;  %v308_v1 = vmov 0.0   ;;  %v309_v2 = vmov 127  }
  0x13   :  { %240 = vmatprep.subr.bf16.mxu0 %v306_v0  ;;  %237 = vmatprep.mubr.msk.f32.mxu0 %vm307_vm0, %v308_v1  ;;  %v29_v3 = vld [vmem:[#allocation2] sm:$0xff]  ;;  %v30_v4 = vld [vmem:[#allocation2 + $0x8] sm:$0xff]  ;;  %v31_v5 = vld [vmem:[#allocation2 + $0x10] sm:$0xff]  ;;  %v310_v30 = vmov 1   ;;  %v311_v31 = vmov 0   ;;  %v312_v35 = vmov 2  }
  0x14   :  { %274 = vset.pattern.permute.xlu0 %v309_v2  ;;  %v241_v6 = vpack.c.bf16 %v30_v4, %v29_v3  ;;  %v32_v7 = vld [vmem:[#allocation2 + $0x18] sm:$0xff]  ;;  %v33_v9 = vld [vmem:[#allocation2 + $0x20] sm:$0xff]  ;;  %v34_v10 = vld [vmem:[#allocation2 + $0x28] sm:$0xff]  ;;  %276 = vset.pattern.permute.xlu1 %v310_v30  ;;  %vm177_vm4 = vcmask 7168   ;;  %vm179_vm5 = vcmask 15360   ;;  %vm181_vm6 = vcmask 23552  }
  0x15   :  { %v244_v8 = vpack.c.bf16 %v32_v7, %v31_v5  ;;  %v247_v11 = vpack.c.bf16 %v34_v10, %v33_v9  ;;  %v35_v12 = vld [vmem:[#allocation2 + $0x30] sm:$0xff]  ;;  %v36_v13 = vld [vmem:[#allocation2 + $0x38] sm:$0xff]  ;;  %v37_v15 = vld [vmem:[#allocation2 + $0x40] sm:$0xff] }
  0x16   :  { %242 = vmatpush3.bf16.msra.mxu0 %v241_v6  ;;  %v250_v14 = vpack.c.bf16 %v36_v13, %v35_v12  ;;  %v38_v16 = vld [vmem:[#allocation2 + $0x48] sm:$0xff]  ;;  %v39_v18 = vld [vmem:[#allocation2 + $0x50] sm:$0xff]  ;;  %v40_v19 = vld [vmem:[#allocation2 + $0x58] sm:$0xff] }
  0x17   :  { %243 = vmatprep.subr.bf16.mxu0 %v306_v0  ;;  %v253_v17 = vpack.c.bf16 %v38_v16, %v37_v15  ;;  %v256_v20 = vpack.c.bf16 %v40_v19, %v39_v18  ;;  %v41_v21 = vld [vmem:[#allocation2 + $0x60] sm:$0xff]  ;;  %v42_v22 = vld [vmem:[#allocation2 + $0x68] sm:$0xff]  ;;  %v43_v24 = vld [vmem:[#allocation2 + $0x70] sm:$0xff] }
  0x18   :  { %v259_v23 = vpack.c.bf16 %v42_v22, %v41_v21  ;;  %v44_v25 = vld [vmem:[#allocation2 + $0x78] sm:$0xff]  ;;  %v28_v27 = vld [vmem:[%s354_s0] sm:$0xff] }
  0x19   :  { %v262_v26 = vpack.c.bf16 %v44_v25, %v43_v24  ;;  %v115_v32 = vld [vmem:[%s356_s2] sm:$0xff] }
  0x1a   :  { %245 = vmatpush3.bf16.msra.mxu0 %v244_v8 }
  0x1b   :  { %246 = vmatprep.subr.bf16.mxu0 %v306_v0 }
  0x1e   :  { %248 = vmatpush3.bf16.msra.mxu0 %v247_v11 }
  0x1f   :  { %249 = vmatprep.subr.bf16.mxu0 %v306_v0 }
  0x22   :  { %251 = vmatpush3.bf16.msra.mxu0 %v250_v14 }
  0x23   :  { %252 = vmatprep.subr.bf16.mxu0 %v306_v0 }
  0x26   :  { %254 = vmatpush3.bf16.msra.mxu0 %v253_v17 }
  0x27   :  { %255 = vmatprep.subr.bf16.mxu0 %v306_v0 }
  0x2a   :  { %257 = vmatpush3.bf16.msra.mxu0 %v256_v20 }
  0x2b   :  { %258 = vmatprep.subr.bf16.mxu0 %v306_v0 }
  0x2e   :  { %260 = vmatpush3.bf16.msra.mxu0 %v259_v23 }
  0x2f   :  { %261 = vmatprep.subr.bf16.mxu0 %v306_v0 }
  0x32   :  { %263 = vmatpush3.bf16.msra.mxu0 %v262_v26 }
  0x35   :  { %238 = vmatmul.mubr.f32.vlgmr.msra.gmra.mrb[0].mxu0 %v28_v27 }
 0x108   :  { %v111_v28 = vpop.f32.mrb[0].mxu0 }
 0x109   :  { %118 = vperm.xlu0 %274, %v111_v28   ;;  %v239_v29 = vpop.f32.mrb[1].mxu0 }
 0x10d   :  { %275 = vset.pattern.permute.xlu0 %v311_v31 }
 0x188   :  { %v119_v33 = vpop.permute.xlu0 %118 }
 0x189   :  { %v121_v34 = vmul.f32 %v119_v33, %v115_v32 }
 0x18b   :  { %142 = vperm.xlu1 %276, %v121_v34   ;;  %124 = vperm.xlu0 %275, %v121_v34  }
 0x18f   :  { %277 = vset.pattern.permute.xlu1 %v312_v35  ;;  %278 = vset.pattern.permute.xlu0 %v312_v35 }
 0x190   :  { %160 = vperm.xlu1 %277, %v121_v34  }
 0x20a   :  { %v143_v36 = vpop.permute.xlu1 %142  ;;  %v125_v37 = vpop.permute.xlu0 %124 }
 0x20b   :  { %vm145_vm1 = vcmp.le.f32.partialorder %v111_v28, %v143_v36  ;;  %vm127_vm2 = vcmp.le.f32.partialorder %v111_v28, %v125_v37 }
 0x20c   :  { %v146_v38 = vsel %vm145_vm1, 1, %v311_v31  ;;  %v128_v39 = vsel %vm127_vm2, 1, %v311_v31 }
 0x20d   :  { %v130_v40 = vshrl.u32 %v128_v39, 16  ;;  %v129_v41 = vand.u32 65535, %v128_v39  ;;  %v148_v45 = vshrl.u32 %v146_v38, 16  ;;  %v147_v49 = vand.u32 65535, %v146_v38 }
 0x20f   :  { %v161_v42 = vpop.permute.xlu1 %160  ;;  %v132_v43 = vcvt.s32.f32 %v130_v40  ;;  %v131_v44 = vcvt.s32.f32 %v129_v41  ;;  %v150_v48 = vcvt.s32.f32 %v148_v45  ;;  %v149_v52 = vcvt.s32.f32 %v147_v49 }
 0x210   :  { %vm163_vm3 = vcmp.le.f32.partialorder %v111_v28, %v161_v42 }
 0x211   :  { %v164_v46 = vsel %vm163_vm3, 1, %v311_v31  ;;  %135 = vadd.xlane.f32.xlu0 %v132_v43  ;;  %133 = vadd.xlane.f32.xlu1 %v131_v44 }
 0x212   :  { %v166_v47 = vshrl.u32 %v164_v46, 16  ;;  %v165_v51 = vand.u32 65535, %v164_v46 }
 0x214   :  { %v168_v50 = vcvt.s32.f32 %v166_v47  ;;  %v167_v53 = vcvt.s32.f32 %v165_v51 }
 0x215   :  { %153 = vadd.xlane.f32.xlu0 %v150_v48 }
 0x216   :  { %171 = vadd.xlane.f32.xlu1 %v168_v50 }
 0x219   :  { %151 = vadd.xlane.f32.xlu0 %v149_v52 }
 0x21a   :  { %169 = vadd.xlane.f32.xlu1 %v167_v53 }
 0x29e   :  { %v136_v54 = vpop.xlane.xlu0 %135  ;;  %v134_v55 = vpop.xlane.xlu1 %133 }
 0x29f   :  { %v138_v56 = vcvt.f32.s32 %v136_v54  ;;  %v137_v63 = vcvt.f32.s32 %v134_v55 }
 0x2a1   :  { %v139_v61 = vshll.u32 %v138_v56, 16 }
 0x2a2   :  { %v154_v57 = vpop.xlane.xlu0 %153 }
 0x2a3   :  { %v156_v58 = vcvt.f32.s32 %v154_v57  ;;  %v172_v59 = vpop.xlane.xlu1 %171  ;;  %v140_v5 = vadd.s32 %v139_v61, %v137_v63 }
 0x2a4   :  { %v174_v60 = vcvt.f32.s32 %v172_v59 }
 0x2a5   :  { %v157_v0 = vshll.u32 %v156_v58, 16 }
 0x2a6   :  { %v152_v62 = vpop.xlane.xlu0 %151  ;;  %v175_v3 = vshll.u32 %v174_v60, 16 }
 0x2a7   :  { %v155_v1 = vcvt.f32.s32 %v152_v62  ;;  %v170_v2 = vpop.xlane.xlu1 %169 }
 0x2a8   :  { %v173_v4 = vcvt.f32.s32 %v170_v2 }
 0x2a9   :  { %v158_v6 = vadd.s32 %v157_v0, %v155_v1 }
 0x2aa   :  { %v176_v7 = vadd.s32 %v175_v3, %v173_v4 }
 0x2ab   :  { %v178_v8 = vsel %vm177_vm4, %v140_v5, %v158_v6 }
 0x2ac   :  { %v180_v9 = vsel %vm179_vm5, %v178_v8, %v176_v7 }
 0x2ad   :  { %182 = vst.msk [vmem:[%s357_s3] sm:$0xff] %vm181_vm6, %v180_v9 }
 0x2ae   :  { %187 = vsyncpa [#allocation3], 1 }

</bundles_post_ra>
